<compile_context>
chip_gen: v7x
topology: tpu7x:2x2x1
jax: 0.10.0
libtpu: 0.0.40
codegen_flags: <defaults>
</compile_context>

<pallas_src>
import functools
import math

import jax
import jax.numpy as jnp
from jax.experimental import pallas as pl
from jax.experimental.pallas import tpu as pltpu


_TGT_ROW_BYTES = 128 * 4        # a (tn, 1) int32 block is lane-padded to 128 lanes
_OUT_BLOCK_BYTES = 8 * 128 * 4  # (1, 8, 128) f32 partial-sum block


def _vmem_capacity_bytes():
    """Per-core VMEM capacity; conservative 64 MiB fallback (v7x) if unavailable."""
    try:
        info = pltpu.get_tpu_info()
        for attr in ("vmem_capacity_bytes", "vmem_size_bytes", "vmem_bytes"):
            cap = getattr(info, attr, None)
            if cap:
                return int(cap)
    except Exception:
        pass
    return 64 * 2**20


def _choose_tiles(n, v, itemsize, footprint_budget):
    """Pick (tn, tv): row tile (sublanes) and vocab tile (lanes).

    Per grid step Pallas double-buffers each input/output block, so the resident
    footprint is ~ 2 * (tn*tv*itemsize + tn*_TGT_ROW_BYTES + _OUT_BLOCK_BYTES).
    """
    per_buf = footprint_budget // 2 - _OUT_BLOCK_BYTES

    def rows_for(tile_v):
        return per_buf // (tile_v * itemsize + _TGT_ROW_BYTES)

    tv = v
    if rows_for(tv) < 8:
        # Very large vocab: split V into lane-aligned tiles so an 8-row block still
        # fits the budget; the V axis becomes the last ("arbitrary") grid axis.
        tv = (per_buf // 8 - _TGT_ROW_BYTES) // itemsize
        tv = max(128, (tv // 128) * 128)
        tv = min(tv, v)

    tn = rows_for(tv)
    tn = max(8, (tn // 8) * 8)
    if n >= 8:
        tn = min(tn, ((n + 7) // 8) * 8)
    else:
        tn = n  # block equals the (tiny) full array in the sublane dim

    # Guarantee >= 2 row tiles so the "parallel" row axis can shard across both
    # TensorCores on multi-core chips (v7x); near-free on single-core chips.
    if n >= 16 and -(-n // tn) < 2:
        tn = ((-(-n // 2) + 7) // 8) * 8

    return tn, tv


def _label_smoothing_kernel(x_ref, tgt_ref, out_ref, *, n_rows, v_total, tn, tv,
                            padding_idx, fill, confidence, const_entropy, ragged_v):
    j = pl.program_id(1)                                        # V-tile index (last axis)

    x = x_ref[...].astype(jnp.float32)                          # (tn, tv) log-probs
    tgt = tgt_ref[...]                                          # (tn, 1) int32

    col0 = j * tv
    col = jax.lax.broadcasted_iota(jnp.int32, (tn, tv), 1) + col0
    row = (jax.lax.broadcasted_iota(jnp.int32, (tn, 1), 0)
           + pl.program_id(0) * tn)

    # Per-lane base weight of the smoothed distribution: `fill` everywhere, 0 at the
    # padding column (O(tv) work, broadcast along sublanes).
    lane = jax.lax.broadcasted_iota(jnp.int32, (1, tv), 1) + col0
    base_w = jnp.where(lane == padding_idx, 0.0, jnp.float32(fill))

    # Full weight: `confidence` at the target column, base weight elsewhere.  One
    # fused weighted row reduction replaces separate rowsum / x[:,pad] / x[target].
    w = jnp.where(col == tgt, jnp.float32(confidence), base_w)  # (tn, tv)
    weighted = x * w
    if ragged_v:
        # Last V tile overhangs the vocab: use a *select* (not multiply-by-mask) so
        # garbage (possibly NaN) lanes past V are discarded.
        weighted = jnp.where(col < v_total, weighted, 0.0)
    per_row = jnp.sum(weighted, axis=-1, keepdims=True)         # (tn, 1)

    # Constant entropy term sum(td*log(td)) added exactly once per row (at j == 0).
    const_term = jnp.where(j == 0, jnp.float32(const_entropy), jnp.float32(0.0))
    per_row_loss = const_term - per_row

    # Zero padding-target rows and rows past N (ragged last row tile).  NOTE: this
    # must remain a select (jnp.where) — a multiply-by-mask would propagate NaNs
    # from whatever garbage Pallas reads past the end of the array.
    valid = jnp.logical_and(row < n_rows, tgt != padding_idx)
    per_row_loss = jnp.where(valid, per_row_loss, 0.0)

    partial = jnp.sum(per_row_loss)

    # The (1, 8, 128) output block is resident across the last ("arbitrary") V axis:
    # zero it at j == 0, accumulate, wrapper reads [:, 0, 0].  Lane-dense full store.
    @pl.when(j == 0)
    def _():
        out_ref[...] = jnp.zeros_like(out_ref)
    out_ref[...] += partial


def label_smoothing_loss(x, target, *, size, padding_idx, smoothing=0.0,
                         tn=None, tv=None, footprint_budget=None):
    """x: (N, size) float32/bfloat16 log-probs; target: (N,) int.  Returns scalar f32
    loss equal to KLDivLoss(size_average=False)(x, smoothed_target_distribution)."""
    N, V = x.shape
    assert V == size
    assert size > 2, "label smoothing fill = smoothing/(size-2) requires size > 2"

    confidence = 1.0 - smoothing
    fill = smoothing / (size - 2)
    const_entropy = 0.0
    if confidence > 0.0:
        const_entropy += confidence * math.log(confidence)
    if fill > 0.0:
        const_entropy += (size - 2) * fill * math.log(fill)

    vmem_cap = _vmem_capacity_bytes()
    if footprint_budget is None:
        # Double-buffered working-set budget: fits v7x's 64 MiB per-core VMEM while
        # still being far past the default scoped limits on v5e/v6e.
        footprint_budget = min((5 * vmem_cap) // 8, 40 * 2**20)

    itemsize = x.dtype.itemsize
    auto_tn, auto_tv = _choose_tiles(N, V, itemsize, footprint_budget)
    tn = auto_tn if tn is None else tn
    tv = auto_tv if tv is None else tv

    num_row_tiles = int(pl.cdiv(N, tn))
    num_v_tiles = int(pl.cdiv(V, tv))
    ragged_v = num_v_tiles * tv > V

    tgt2d = target.reshape(N, 1).astype(jnp.int32)

    kernel = functools.partial(
        _label_smoothing_kernel,
        n_rows=N, v_total=V, tn=tn, tv=tv, padding_idx=int(padding_idx),
        fill=float(fill), confidence=float(confidence),
        const_entropy=float(const_entropy), ragged_v=bool(ragged_v))

    cost = pl.CostEstimate(
        flops=4 * N * V,
        transcendentals=0,
        bytes_accessed=N * V * itemsize + N * 4 + num_row_tiles * _OUT_BLOCK_BYTES)

    footprint = 2 * (tn * tv * itemsize + tn * _TGT_ROW_BYTES + _OUT_BLOCK_BYTES)
    vmem_limit = int(min(vmem_cap, max(32 * 2**20, footprint + 8 * 2**20)))

    partials = pl.pallas_call(
        kernel,
        out_shape=jax.ShapeDtypeStruct((num_row_tiles, 8, 128), jnp.float32),
        grid_spec=pltpu.PrefetchScalarGridSpec(
            num_scalar_prefetch=0,
            grid=(num_row_tiles, num_v_tiles),
            in_specs=[
                pl.BlockSpec((tn, tv), lambda i, j: (i, j)),
                pl.BlockSpec((tn, 1), lambda i, j: (i, 0)),
            ],
            out_specs=pl.BlockSpec((1, 8, 128), lambda i, j: (i, 0, 0)),
        ),
        compiler_params=pltpu.CompilerParams(
            dimension_semantics=("parallel", "arbitrary"),
            vmem_limit_bytes=vmem_limit),
        cost_estimate=cost,
    )(x, tgt2d)

    # Tiny final reduction over per-row-tile partials (better summation accuracy
    # than a serial scalar accumulator; also avoids a resident cross-tile output).
    return jnp.sum(partials[:, 0, 0])


def _reference_loss(x, target, *, size, padding_idx, smoothing):
    confidence = 1.0 - smoothing
    N, V = x.shape
    col = jnp.arange(V)[None, :]
    tgt = target[:, None]
    td = jnp.full((N, V), smoothing / (size - 2), jnp.float32)
    td = jnp.where(col == tgt, confidence, td)
    td = jnp.where(col == padding_idx, 0.0, td)
    td = jnp.where(tgt == padding_idx, 0.0, td)
    kl = jnp.where(td > 0.0, td * (jnp.log(jnp.where(td > 0.0, td, 1.0)) - x), 0.0)
    return jnp.sum(kl)


if __name__ == "__main__":
    # TODO(synk): the PyTorch module also stashes `self.true_dist` as a side effect;
    # the full (N, V) smoothed distribution is intentionally not materialized here.
    PADDING_IDX = 0
    SMOOTHING = 0.1

    key = jax.random.PRNGKey(0)
    k1, k2, k3, k4, k5, k6 = jax.random.split(key, 6)

    # Case 1: f32 log-probs, N a multiple of 8 (auto tiles; >=2 row tiles).
    N, SIZE = 16, 128
    x = jax.nn.log_softmax(jax.random.normal(k1, (N, SIZE), jnp.float32), axis=-1)
    target = jax.random.randint(k2, (N,), 0, SIZE, jnp.int32)
    target = target.at[3].set(PADDING_IDX).at[7].set(PADDING_IDX)
    loss = jax.block_until_ready(label_smoothing_loss(
        x, target, size=SIZE, padding_idx=PADDING_IDX, smoothing=SMOOTHING))
    ref = _reference_loss(x, target, size=SIZE, padding_idx=PADDING_IDX,
                          smoothing=SMOOTHING)
    assert jnp.allclose(loss, ref, rtol=1e-4, atol=1e-4), (loss, ref)

    # Case 2: ragged N plus a forced V split with a ragged last V tile (exercises the
    # second "arbitrary" grid axis, the resident output accumulator and both masks).
    N2, SIZE2 = 13, 384
    x2 = jax.nn.log_softmax(jax.random.normal(k3, (N2, SIZE2), jnp.float32), axis=-1)
    target2 = jax.random.randint(k4, (N2,), 0, SIZE2, jnp.int32).at[0].set(PADDING_IDX)
    loss2 = jax.block_until_ready(label_smoothing_loss(
        x2, target2, size=SIZE2, padding_idx=PADDING_IDX, smoothing=SMOOTHING,
        tn=8, tv=256))
    ref2 = _reference_loss(x2, target2, size=SIZE2, padding_idx=PADDING_IDX,
                           smoothing=SMOOTHING)
    assert jnp.allclose(loss2, ref2, rtol=1e-4, atol=1e-4), (loss2, ref2)

    # Case 3: bfloat16 log-probs (halves HBM traffic; f32 accumulation in-kernel).
    N3, SIZE3 = 24, 256
    x3 = jax.nn.log_softmax(jax.random.normal(k5, (N3, SIZE3), jnp.float32),
                            axis=-1).astype(jnp.bfloat16)
    target3 = jax.random.randint(k6, (N3,), 0, SIZE3, jnp.int32).at[5].set(PADDING_IDX)
    loss3 = jax.block_until_ready(label_smoothing_loss(
        x3, target3, size=SIZE3, padding_idx=PADDING_IDX, smoothing=SMOOTHING))
    ref3 = _reference_loss(x3.astype(jnp.float32), target3, size=SIZE3,
                           padding_idx=PADDING_IDX, smoothing=SMOOTHING)
    assert jnp.allclose(loss3, ref3, rtol=2e-3, atol=2e-3), (loss3, ref3)

    print("KERNEL_OK")
</pallas_src>

<mosaic_0001>
module attributes {stable_mosaic.version = 11 : i64} {
  func.func @_label_smoothing_kernel(%arg0: i32, %arg1: i32, %arg2: memref<8x128xf32, #tpu.memory_space<vmem>>, %arg3: memref<8x1xi32, #tpu.memory_space<vmem>>, %arg4: memref<1x8x128xf32, #tpu.memory_space<vmem>>) attributes {dimension_semantics = [#tpu.dimension_semantics<parallel>, #tpu.dimension_semantics<arbitrary>], iteration_bounds = array<i64: 2, 1>, scalar_prefetch = 0 : i64, scratch_operands = 0 : i64, tpu.core_type = #tpu.core_type<tc>, window_params = [{transform_indices = @transform_0, window_bounds = array<i64: 8, 128>}, {transform_indices = @transform_1, window_bounds = array<i64: 8, 1>}, {transform_indices = @transform_2, window_bounds = array<i64: 1, 8, 128>}]} {
    %c0 = arith.constant 0 : index
    %c0_0 = arith.constant 0 : index
    %0 = vector.load %arg2[%c0, %c0_0] : memref<8x128xf32, #tpu.memory_space<vmem>>, vector<8x128xf32>
    %c0_1 = arith.constant 0 : index
    %c0_2 = arith.constant 0 : index
    %1 = vector.load %arg3[%c0_1, %c0_2] : memref<8x1xi32, #tpu.memory_space<vmem>>, vector<8x1xi32>
    %c128_i32 = arith.constant 128 : i32
    %2 = arith.muli %arg1, %c128_i32 : i32
    %3 = tpu.iota {dimensions = array<i32: 1>} : vector<8x128xi32>
    %4 = vector.broadcast %2 : i32 to vector<8x128xi32>
    %5 = arith.addi %3, %4 : vector<8x128xi32>
    %6 = tpu.iota {dimensions = array<i32: 0>} : vector<8x1xi32>
    %c8_i32 = arith.constant 8 : i32
    %7 = arith.muli %arg0, %c8_i32 : i32
    %8 = vector.broadcast %7 : i32 to vector<8x1xi32>
    %9 = arith.addi %6, %8 : vector<8x1xi32>
    %10 = tpu.iota {dimensions = array<i32: 1>} : vector<1x128xi32>
    %11 = vector.broadcast %2 : i32 to vector<1x128xi32>
    %12 = arith.addi %10, %11 : vector<1x128xi32>
    %c0_i32 = arith.constant 0 : i32
    %13 = vector.broadcast %c0_i32 : i32 to vector<1x128xi32>
    %14 = arith.cmpi eq, %12, %13 : vector<1x128xi32>
    %cst = arith.constant 0.000000e+00 : f32
    %cst_3 = arith.constant 7.93650805E-4 : f32
    %15 = vector.broadcast %cst : f32 to vector<1x128xf32>
    %16 = vector.broadcast %cst_3 : f32 to vector<1x128xf32>
    %17 = arith.select %14, %15, %16 : vector<1x128xi1>, vector<1x128xf32>
    %18 = vector.broadcast %1 : vector<8x1xi32> to vector<8x128xi32>
    %19 = arith.cmpi eq, %5, %18 : vector<8x128xi32>
    %cst_4 = arith.constant 0.899999976 : f32
    %20 = vector.broadcast %cst_4 : f32 to vector<8x128xf32>
    %21 = vector.shape_cast %17 : vector<1x128xf32> to vector<1x128xf32>
    %22 = vector.broadcast %21 : vector<1x128xf32> to vector<8x128xf32>
    %23 = arith.select %19, %20, %22 : vector<8x128xi1>, vector<8x128xf32>
    %24 = arith.mulf %0, %23 : vector<8x128xf32>
    %cst_5 = arith.constant dense<0.000000e+00> : vector<8xf32>
    %25 = vector.multi_reduction <add>, %24, %cst_5 [1] : vector<8x128xf32> to vector<8xf32>
    %26 = vector.shape_cast %25 : vector<8xf32> to vector<8x1xf32>
    %c0_i32_6 = arith.constant 0 : i32
    %27 = arith.cmpi eq, %arg1, %c0_i32_6 : i32
    %cst_7 = arith.constant -0.808711171 : f32
    %cst_8 = arith.constant 0.000000e+00 : f32
    %28 = arith.select %27, %cst_7, %cst_8 : f32
    %29 = vector.broadcast %28 : f32 to vector<8x1xf32>
    %30 = arith.subf %29, %26 : vector<8x1xf32>
    %c16_i32 = arith.constant 16 : i32
    %31 = vector.broadcast %c16_i32 : i32 to vector<8x1xi32>
    %32 = arith.cmpi slt, %9, %31 : vector<8x1xi32>
    %c0_i32_9 = arith.constant 0 : i32
    %33 = vector.broadcast %c0_i32_9 : i32 to vector<8x1xi32>
    %34 = arith.cmpi ne, %1, %33 : vector<8x1xi32>
    %35 = arith.andi %32, %34 : vector<8x1xi1>
    %cst_10 = arith.constant 0.000000e+00 : f32
    %36 = vector.broadcast %cst_10 : f32 to vector<8x1xf32>
    %37 = arith.select %35, %30, %36 : vector<8x1xi1>, vector<8x1xf32>
    %38 = vector.shape_cast %37 : vector<8x1xf32> to vector<1x8x1xf32>
    %cst_11 = arith.constant dense<0.000000e+00> : vector<1xf32>
    %39 = vector.multi_reduction <add>, %38, %cst_11 [1, 2] : vector<1x8x1xf32> to vector<1xf32>
    %40 = vector.shape_cast %39 : vector<1xf32> to vector<1x1x1xf32>
    %41 = vector.extract %40[0, 0, 0] : f32 from vector<1x1x1xf32>
    %c0_i32_12 = arith.constant 0 : i32
    %42 = arith.cmpi eq, %arg1, %c0_i32_12 : i32
    %43 = arith.extui %42 : i1 to i32
    %c0_i32_13 = arith.constant 0 : i32
    %44 = arith.cmpi ne, %43, %c0_i32_13 : i32
    scf.if %44 {
      %cst_20 = arith.constant 0.000000e+00 : f32
      %49 = vector.broadcast %cst_20 : f32 to vector<1x8x128xf32>
      %c0_21 = arith.constant 0 : index
      %c0_22 = arith.constant 0 : index
      %c0_23 = arith.constant 0 : index
      %50 = vector.load %arg4[%c0_21, %c0_22, %c0_23] : memref<1x8x128xf32, #tpu.memory_space<vmem>>, vector<1x8x128xf32>
      tpu.vector_store %arg4[%c0_21, %c0_22, %c0_23], %49 {strides = array<i32>} : memref<1x8x128xf32, #tpu.memory_space<vmem>>, vector<1x8x128xf32>,
    } else {
    }
    %c0_14 = arith.constant 0 : index
    %c0_15 = arith.constant 0 : index
    %c0_16 = arith.constant 0 : index
    %45 = vector.load %arg4[%c0_14, %c0_15, %c0_16] : memref<1x8x128xf32, #tpu.memory_space<vmem>>, vector<1x8x128xf32>
    %46 = vector.broadcast %41 : f32 to vector<1x8x128xf32>
    %47 = arith.addf %45, %46 : vector<1x8x128xf32>
    %c0_17 = arith.constant 0 : index
    %c0_18 = arith.constant 0 : index
    %c0_19 = arith.constant 0 : index
    %48 = vector.load %arg4[%c0_17, %c0_18, %c0_19] : memref<1x8x128xf32, #tpu.memory_space<vmem>>, vector<1x8x128xf32>
    tpu.vector_store %arg4[%c0_17, %c0_18, %c0_19], %47 {strides = array<i32>} : memref<1x8x128xf32, #tpu.memory_space<vmem>>, vector<1x8x128xf32>,
    return
  }
  func.func @transform_0(%arg0: i32, %arg1: i32) -> (i32, i32) {
    %c0_i32 = arith.constant 0 : i32
    return %arg0, %arg1 : i32, i32
  }
  func.func @transform_1(%arg0: i32, %arg1: i32) -> (i32, i32) {
    %c0_i32 = arith.constant 0 : i32
    %c0_i32_0 = arith.constant 0 : i32
    return %arg0, %c0_i32 : i32, i32
  }
  func.func @transform_2(%arg0: i32, %arg1: i32) -> (i32, i32, i32) {
    %c0_i32 = arith.constant 0 : i32
    %c0_i32_0 = arith.constant 0 : i32
    %c0_i32_1 = arith.constant 0 : i32
    return %arg0, %c0_i32, %c0_i32_0 : i32, i32, i32
  }
}

</mosaic_0001>

<bundles_post_ra>
// kernel: tpu_custom_call.1
= control target key start
LH: loop header
LB: loop body
LE: loop exit
PB: predicated region body
PF: predicated region fallthrough
CT: control target
= control target key end

     0   :  { %7 = vsyncpa [#allocation3], 0  ;;  %s612_s0 = inlined_call_operand.vmem [shape: f32[16,128], index: 0, kind: input, shape index: {}]   ;;  %s613_s1 = inlined_call_operand.vmem [shape: s32[16,1], index: 1, kind: input, shape index: {}]   ;;  %s614_s2 = inlined_call_operand.hbm [shape: f32[2,8,128], index: 2, kind: output, shape index: {}]  }
   0x1   :  { %9 = vsyncpa [#allocation3 + $0x1], 0  ;;  %s496_s9 = smov 0   ;;  %s498_s10 = smov 0  }
   0x2   :  { %s500_s11 = smov 0   ;;  %s502_s12 = smov 0  }
   0x3   :  { %s504_s13 = smov 0   ;;  %s506_s14 = smov 0  }
   0x4 LB: > { %s324_s15 = sadd.s32 4294967295, %s476_s14   ;;  %s325_s16 = sadd.s32 4294967294, %s476_s14   ;;  %s476_s14 = sphi %s506_s14, %s15_s14   ;;  %s472_s13 = sphi %s504_s13, %s621_s13   ;;  %s468_s12 = sphi %s502_s12, %s620_s12   ;;  %s464_s11 = sphi %s500_s11, %s619_s11   ;;  %s460_s10 = sphi %s498_s10, %s618_s10   ;;  %s456_s9 = sphi %s496_s9, %s617_s9  }
   0x5   : > { %s27_s17 = sadd.s32 1, %s472_s13  ;;  %s88_s18 = sadd.s32 1, %s464_s11 }
   0x6   : > { %p29_p0 = scmp.ge.s32.totalorder %s27_s17, 2  ;;  %p98_p1 = scmp.ne.s32.totalorder %s464_s11, %s460_s10 }
   0x7   : > { %p99_p2 = scmp.eq.s32.totalorder %s324_s15, 1  ;;  %p104_p3 = scmp.ne.s32.totalorder %s460_s10, %s456_s9 }
   0x8   : > { %s623_s17 = smov (%p29_p0, %s27_s17), 0  ;;  %p105_p5 = scmp.eq.s32.totalorder %s325_s16, 1 }
   0x9   : > { %p536_p4 = por %p99_p2, %p98_p1  ;;  %s85_s20 = ssub.s32 %s472_s13, %s623_s17 }
   0xa   : > { %p328_p6 = scmp.ge.s32.totalorder %s476_s14, 1  ;;  %p86_p7 = scmp.eq.s32.totalorder %s85_s20, 0 }
   0xb   : > { %p543_p8 = por %p105_p5, %p104_p3  ;;  %p140_p9 = scmp.lt.s32.totalorder %s476_s14, 3 }
   0xc   : > { %s549_s22 = scalar_select %p86_p7, %s464_s11, %s88_s18  }
   0xd   : > { %p141_p10 = pnand %p328_p6, %p140_p9 }
   0xe   : > { %p168_p11 = scmp.lt.s32.totalorder (!%p141_p10), %s468_s12, 1  ;;  %v478_v0 = vmov (!%p141_p10), 0   ;;  %v182_v2 = vlaneseq (!%p141_p10)  ;;  %v479_v4 = vmov (!%p141_p10), 0.0007936508   ;;  %s332_s3 = sshll.u32 (!%p141_p10), %s468_s12, 3  ;;  %vm209_vm5 = vcmask (!%p141_p10), 7168  }
   0xf   : > { %144 = sbr.rel (%p141_p10) target bundleno = 524 (0x20c), region = 28  ;;  %397 = vset.pattern.permute.xlu0 (!%p141_p10), %v478_v0  ;;  %v189_v11 = vstv (!%p141_p10), %s332_s3  ;;  %s165_s4 = sand.u32 (!%p141_p10), 1, %s460_s10  }
  0x10   : > { %v183_v3 = vand.u32 (!%p141_p10), 127, %v182_v2  ;;  %v187_v10 = vshrl.u32 (!%p141_p10), %v182_v2, 7  ;;  %s329_s5 = sshll.u32 (!%p141_p10), %s165_s4, 3  ;;  %s334_s6 = sshll.u32 (!%p141_p10), %s468_s12, 7 }
  0x11   : > { %s167_s7 = scalar_lea.vmem (!%p141_p10), [#allocation2], %s329_s5  ;;  %s565_s20 = scalar_lea.hbm (!%p141_p10), %s614_s2, %s334_s6 }
  0x12   : > { %vm191_vm0 = vcmp.eq.s32.totalorder (!%p141_p10), %v183_v3, 0  ;;  %v190_v12 = vadd.s32 (!%p141_p10), %v189_v11, %v187_v10  ;;  %s242_s8 = sshll.u32 (!%p141_p10), %s167_s7, 4  ;;  %s567_s8 = int_to_ptr.vmem [resolvable:$true] %s242_s8 }
  0x13   : > { %v192_v5 = vsel (!%p141_p10), %vm191_vm0, 0.0, %v479_v4 }
  0x14   : > { %vm205_vm3 = vcmp.lt.s32.totalorder (!%p141_p10), %v190_v12, 16 }
  0x16   : > { %s169_s23 = scalar_select %p168_p11, %s468_s12, 1 }
  0x17   : > { %s480_s12 = smov [#allocation2]  }
  0x18   : > { %s330_s24 = sshll.u32 %s169_s23, 3  ;;  %s229_s23 = scalar_lea.sflag [#allocation3], %s165_s4 }
  0x19   : > { %s178_s27 = scalar_lea.vmem %s613_s1, %s330_s24  ;;  %s174_s30 = scalar_lea.vmem %s612_s0, %s330_s24 }
  0x1a   : > { %v180_v1 = vld [vmem:[%s178_s27] sm:$0xff]  ;;  %s398_s24 = scalar_lea.vmem %s567_s8, 128  ;;  %s402_s25 = sshll.u32 %s480_s12, 4  ;;  %s403_s25 = int_to_ptr.vmem [resolvable:$false] %s402_s25 }
  0x1b   : > { %194 = vperm.xlu0 %397, %v180_v1   ;;  %v179_v7 = vld [vmem:[%s174_s30] sm:$0xff]  ;;  %vm206_vm2 = vcmp.ne.s32.totalorder %v180_v1, 0  ;;  %p399_p12 = scmp.ne.s32.totalorder %s567_s8, %s398_s24  ;;  %s404_s26 = scalar_lea.vmem %s403_s25, 256 }
  0x1c   : > { %vm207_vm4 = vmand %vm205_vm3, %vm206_vm2  ;;  %p405_p1 = scmp.lt.s32.totalorder %s567_s8, %s403_s25  ;;  %p406_p2 = scmp.lt.s32.totalorder %s404_s26, %s398_s24 }
  0x1d   : > { %p400_p13 = pnand %p399_p12, %p536_p4 }
  0x1e   : > { %p407_p3 = por %p406_p2, %p405_p1 }
  0x1f   : > { %p401_p0 = pneg %p400_p13 }
  0x21   : > { %p408_p5 = pnand %p407_p3, %p401_p0 }
  0x9a   : > { %v195_v6 = vpop.permute.xlu0 %194 }
  0x9b   : > { %vm196_vm1 = vcmp.eq.s32.totalorder %v183_v3, %v195_v6 }
  0x9c   : > { %v197_v8 = vsel %vm196_vm1, 0.9, %v192_v5 }
  0x9d   : > { %v198_v9 = vmul.f32 %v197_v8, %v179_v7 }
  0x9f   : > { %199 = vadd.xlane.f32.xlu0 %v198_v9 }
 0x12c   : > { %v200_v13 = vpop.xlane.xlu0 %199 }
 0x12d   : > { %v204_v14 = vsub.f32 -0.8087112, %v200_v13 }
 0x12f   : > { %v208_v15 = vsel %vm207_vm4, %v204_v14, 0.0 }
 0x130   : > { %v210_v16 = vsel %vm209_vm5, %v208_v15, 0.0 }
 0x131   : > { %211 = vadd.xlane.f32.xlu1 %v210_v16 }
 0x1be   : > { %v212_v17 = vpop.xlane.xlu1 %211 }
 0x1bf   : > { %v213_v18 = vrot.slane %v212_v17, 4 }
 0x1c1   : > { %v214_v19 = vadd.f32 %v213_v18, %v212_v17 }
 0x1c3   : > { %v215_v20 = vrot.slane %v214_v19, 2 }
 0x1c5   : > { %v216_v21 = vadd.f32 %v215_v20, %v214_v19 }
 0x1c7   : > { %v217_v22 = vrot.slane %v216_v21, 1 }
 0x1c9   : > { %v218_v23 = vadd.f32 %v217_v22, %v216_v21 }
 0x1cb   : > { %337 = vpush %v218_v23 }
 0x1fc   : > { %s338_s15 = spop %337 }
 0x1fd   : > { %v225_v24 = vstv %s338_s15 }
 0x1fe   : > { %227 = vst [vmem:[%s167_s7] sm:$0xff] %v225_v24 }
 0x1ff   : > { %411 = shalt.err (!%p408_p5)
}
 0x200   : > { %s412_s27 = scalar_lea.hbm %s565_s20, 128  ;;  %s416_s30 = scalar_lea.hbm %s614_s2, 256 }
 0x201   : > { %p413_p6 = scmp.ne.s32.totalorder %s565_s20, %s412_s27  ;;  %p417_p10 = scmp.lt.u32.totalorder %s565_s20, %s614_s2 }
 0x202   : > { %p418_p11 = scmp.lt.u32.totalorder %s416_s30, %s412_s27  ;;  %p420_p13 = scmp.lt.u32.totalorder %s412_s27, %s565_s20 }
 0x203   : > { %p414_p7 = pnand %p413_p6, %p536_p4 }
 0x204   : > { %p419_p12 = por %p418_p11, %p417_p10 }
 0x205   : > { %p415_p9 = pneg %p414_p7 }
 0x206   : > { %p421_p0 = por %p420_p13, %p419_p12 }
 0x208   : > { %p422_p1 = pnand %p421_p0, %p415_p9 }
 0x20a   : > { %425 = shalt.err (!%p422_p1)
}
 0x20b   : > { %339 = dma.vmem_to_hbm [thread:$0]  (%p536_p4), %s567_s8, 128, %s565_s20, %s229_s23  }
 0x20c PF: > { %p345_p2 = scmp.ge.s32.totalorder %s476_s14, 2  ;;  %s254_s5 = sand.u32 1, %s456_s9  }
 0x20d   : > { %s255_s6 = scalar_lea.sflag [#allocation3], %s254_s5 }
 0x20e   : > { %p342_p3 = pnand %p345_p2, %p543_p8 }
 0x210   : > { %451 = dma.done.wait (!%p342_p3), %s255_s6, 128  }
 0x211   : > { %453 = vsyncadd (!%p342_p3), %s255_s6, 4294967168  ;;  %s15_s14 = sadd.s32 1, %s476_s14   ;;  %s617_s9 = smov %s460_s10 }
 0x212   : > { %p12_p5 = scmp.ge.s32.totalorder %s15_s14, 4   ;;  %s618_s10 = smov %s464_s11 }
 0x213   : > { %s619_s11 = smov %s549_s22  ;;  %s620_s12 = smov %s472_s13 }
 0x214   : > { %s621_s13 = smov %s623_s17  ;;  %14 = sbr.rel (!%p12_p5) target bundleno = 4 (0x4), region = 70 }
 0x21b   :  { %260 = vsyncpa [#allocation3], 1 }
 0x21c   :  { %262 = vsyncpa [#allocation3 + $0x1], 1 }

</bundles_post_ra>
